<compile_context>
chip_gen: v5e
topology: v5e:2x2
jax: 0.10.0
libtpu: 0.0.40
codegen_flags: <defaults>
</compile_context>

<pallas_src>
import jax
import jax.numpy as jnp
from jax import lax
from jax.experimental import pallas as pl
from jax.experimental.pallas import tpu as pltpu


def lstm_sa_kernel(x_ref, wih_ref, whh_ref, b_ref, wout_ref, bout_ref,
                   out_ref, gx_sc, hh_sc):
    H = whh_ref.shape[0]
    seq_len = x_ref.shape[0]

    # Hoisted input projection (+ fused bias): one batched (seq_len, 4H) matmul,
    # taken off the serial recurrence critical path.
    gx_sc[...] = (jnp.dot(x_ref[...], wih_ref[...],
                          preferred_element_type=jnp.float32)
                  + b_ref[...])                                     # (seq_len, 4H)

    # Recurrent weight kept vreg-resident across all unrolled steps.
    whh = whh_ref[...]                                              # (H, 4H)

    def step(t, carry):
        h, c = carry                                                # (1, H) each, vregs
        # Only the recurrent matmul remains inside the loop.
        gates = (gx_sc[pl.ds(t, 1), :]
                 + jnp.dot(h, whh,
                           preferred_element_type=jnp.float32))     # (1, 4H)

        # Two full-width EUP pushes instead of four per-gate ones.
        sig = jax.nn.sigmoid(gates)                                 # (1, 4H)
        tnh = jnp.tanh(gates)                                       # (1, 4H)
        i_g = sig[:, 0 * H:1 * H]
        f_g = sig[:, 1 * H:2 * H]
        g_g = tnh[:, 2 * H:3 * H]
        o_g = sig[:, 3 * H:4 * H]

        c_new = f_g * c + i_g * g_g
        h_new = o_g * jnp.tanh(c_new)
        hh_sc[pl.ds(t, 1), :] = h_new                               # hidden history
        return (h_new, c_new)

    h0 = jnp.zeros((1, H), jnp.float32)   # PyTorch default: zero initial state
    c0 = jnp.zeros((1, H), jnp.float32)

    # seq_len is static; fully unroll when small, bounded unroll otherwise.
    unroll = seq_len if seq_len <= 16 else 8
    lax.fori_loop(0, seq_len, step, (h0, c0), unroll=unroll)

    # Hoisted output projection: one matmul + one store.
    out_ref[...] = (jnp.dot(hh_sc[...], wout_ref[...],
                            preferred_element_type=jnp.float32)
                    + bout_ref[...])


def lstm_sa_forward(x, w_ih_t, w_hh_t, b, w_out_t, b_out):
    seq_len, _ = x.shape
    hidden = w_hh_t.shape[0]
    vmem = pl.BlockSpec(memory_space=pltpu.MemorySpace.VMEM)
    return pl.pallas_call(
        lstm_sa_kernel,
        out_shape=jax.ShapeDtypeStruct((seq_len, 2), jnp.float32),
        in_specs=[vmem] * 6,
        out_specs=vmem,
        scratch_shapes=[pltpu.VMEM((seq_len, 4 * hidden), jnp.float32),  # gates_x
                        pltpu.VMEM((seq_len, hidden), jnp.float32)],     # h history
    )(x, w_ih_t, w_hh_t, b, w_out_t, b_out)


def lstm_sa_reference(x, w_ih_t, w_hh_t, b, w_out_t, b_out):
    """Pure-JAX reference matching PyTorch nn.LSTM + nn.Linear."""
    H = w_hh_t.shape[0]
    h = jnp.zeros((1, H), jnp.float32)
    c = jnp.zeros((1, H), jnp.float32)

    def step(carry, x_t):
        h, c = carry
        gates = x_t[None, :] @ w_ih_t + h @ w_hh_t + b
        i = jax.nn.sigmoid(gates[:, 0 * H:1 * H])
        f = jax.nn.sigmoid(gates[:, 1 * H:2 * H])
        g = jnp.tanh(gates[:, 2 * H:3 * H])
        o = jax.nn.sigmoid(gates[:, 3 * H:4 * H])
        c = f * c + i * g
        h = o * jnp.tanh(c)
        y = h @ w_out_t + b_out
        return (h, c), y[0]

    _, ys = lax.scan(step, (h, c), x)
    return ys


if __name__ == "__main__":
    # Synthetic transform_pipe: one-hot encoding of integer symbols.
    # input_dim = transform_pipe.fit_transform(seq_to_column([0])).size == vocab
    # TODO(synk): the sklearn-style transform_pipe itself has no Pallas equivalent;
    # it is modeled here as a one-hot encode done in plain JAX on the host side.
    seq_len = 8
    vocab = 4          # -> input_dim
    hidden_dim = 32

    key = jax.random.PRNGKey(0)
    k_seq, k_wih, k_whh, k_bih, k_bhh, k_wo, k_bo = jax.random.split(key, 7)

    seq = jax.random.randint(k_seq, (seq_len,), 0, vocab)
    x = jax.nn.one_hot(seq, vocab, dtype=jnp.float32)            # (seq_len, input_dim)

    # PyTorch-style init: U(-1/sqrt(H), 1/sqrt(H))
    bound = 1.0 / jnp.sqrt(jnp.float32(hidden_dim))
    w_ih = jax.random.uniform(k_wih, (4 * hidden_dim, vocab), jnp.float32, -bound, bound)
    w_hh = jax.random.uniform(k_whh, (4 * hidden_dim, hidden_dim), jnp.float32, -bound, bound)
    b_ih = jax.random.uniform(k_bih, (4 * hidden_dim,), jnp.float32, -bound, bound)
    b_hh = jax.random.uniform(k_bhh, (4 * hidden_dim,), jnp.float32, -bound, bound)
    w_out = jax.random.uniform(k_wo, (2, hidden_dim), jnp.float32, -bound, bound)
    b_out = jax.random.uniform(k_bo, (2,), jnp.float32, -bound, bound)

    # Pre-transpose / fuse biases for the kernel layout.
    w_ih_t = w_ih.T                        # (input_dim, 4H)
    w_hh_t = w_hh.T                        # (H, 4H)
    b_fused = (b_ih + b_hh)[None, :]       # (1, 4H)
    w_out_t = w_out.T                      # (H, 2)
    b_out2 = b_out[None, :]                # (1, 2)

    out = lstm_sa_forward(x, w_ih_t, w_hh_t, b_fused, w_out_t, b_out2)
    out = jax.block_until_ready(out)

    ref = lstm_sa_reference(x, w_ih_t, w_hh_t, b_fused, w_out_t, b_out2)
    assert out.shape == (seq_len, 2)
    assert jnp.allclose(out, ref, atol=1e-5, rtol=1e-5), (out, ref)

    print("KERNEL_OK")
</pallas_src>

<mosaic_0001>
module attributes {stable_mosaic.version = 11 : i64} {
  func.func @lstm_sa_kernel(%arg0: memref<8x4xf32, #tpu.memory_space<vmem>>, %arg1: memref<4x128xf32, #tpu.memory_space<vmem>>, %arg2: memref<32x128xf32, #tpu.memory_space<vmem>>, %arg3: memref<1x128xf32, #tpu.memory_space<vmem>>, %arg4: memref<32x2xf32, #tpu.memory_space<vmem>>, %arg5: memref<1x2xf32, #tpu.memory_space<vmem>>, %arg6: memref<8x2xf32, #tpu.memory_space<vmem>>, %arg7: memref<8x128xf32, #tpu.memory_space<vmem>>, %arg8: memref<8x32xf32, #tpu.memory_space<vmem>>) attributes {dimension_semantics = [], scalar_prefetch = 0 : i64, scratch_operands = 2 : i64, tpu.core_type = #tpu.core_type<tc>} {
    %c0 = arith.constant 0 : index
    %c0_0 = arith.constant 0 : index
    %0 = vector.load %arg0[%c0, %c0_0] : memref<8x4xf32, #tpu.memory_space<vmem>>, vector<8x4xf32>
    %c0_1 = arith.constant 0 : index
    %c0_2 = arith.constant 0 : index
    %1 = vector.load %arg1[%c0_1, %c0_2] : memref<4x128xf32, #tpu.memory_space<vmem>>, vector<4x128xf32>
    %cst = arith.constant dense<0.000000e+00> : vector<8x128xf32>
    %2 = tpu.matmul %0, %1, %cst {dimension_numbers = #tpu.dot_dimension_numbers<[1], [0], [0], [1], [0, 0, 1, 1], [], []>} : vector<8x4xf32>, vector<4x128xf32>, vector<8x128xf32> -> vector<8x128xf32>
    %c0_3 = arith.constant 0 : index
    %c0_4 = arith.constant 0 : index
    %3 = vector.load %arg3[%c0_3, %c0_4] : memref<1x128xf32, #tpu.memory_space<vmem>>, vector<1x128xf32>
    %4 = vector.broadcast %3 : vector<1x128xf32> to vector<8x128xf32>
    %5 = arith.addf %2, %4 : vector<8x128xf32>
    %c0_5 = arith.constant 0 : index
    %c0_6 = arith.constant 0 : index
    %6 = vector.load %arg7[%c0_5, %c0_6] : memref<8x128xf32, #tpu.memory_space<vmem>>, vector<8x128xf32>
    tpu.vector_store %arg7[%c0_5, %c0_6], %5 {strides = array<i32>} : memref<8x128xf32, #tpu.memory_space<vmem>>, vector<8x128xf32>,
    %c0_7 = arith.constant 0 : index
    %c0_8 = arith.constant 0 : index
    %7 = vector.load %arg2[%c0_7, %c0_8] : memref<32x128xf32, #tpu.memory_space<vmem>>, vector<32x128xf32>
    %cst_9 = arith.constant 0.000000e+00 : f32
    %8 = vector.broadcast %cst_9 : f32 to vector<1x32xf32>
    %cst_10 = arith.constant 0.000000e+00 : f32
    %9 = vector.broadcast %cst_10 : f32 to vector<1x32xf32>
    %c0_i32 = arith.constant 0 : i32
    %10 = arith.index_cast %c0_i32 : i32 to index
    %c0_11 = arith.constant 0 : index
    %11 = vector.load %arg7[%10, %c0_11] : memref<8x128xf32, #tpu.memory_space<vmem>>, vector<1x128xf32>
    %cst_12 = arith.constant dense<0.000000e+00> : vector<1x128xf32>
    %12 = tpu.matmul %8, %7, %cst_12 {dimension_numbers = #tpu.dot_dimension_numbers<[1], [0], [0], [1], [0, 0, 1, 1], [], []>} : vector<1x32xf32>, vector<32x128xf32>, vector<1x128xf32> -> vector<1x128xf32>
    %13 = arith.addf %11, %12 : vector<1x128xf32>
    %14 = arith.negf %13 : vector<1x128xf32>
    %15 = math.exp %14 : vector<1x128xf32>
    %cst_13 = arith.constant 1.000000e+00 : f32
    %16 = vector.broadcast %cst_13 : f32 to vector<1x128xf32>
    %17 = arith.addf %16, %15 : vector<1x128xf32>
    %18 = arith.divf %16, %17 : vector<1x128xf32>
    %19 = math.tanh %13 : vector<1x128xf32>
    %20 = vector.extract_strided_slice %18 {offsets = [0, 0], sizes = [1, 32], strides = [1, 1]} : vector<1x128xf32> to vector<1x32xf32>
    %21 = vector.extract_strided_slice %18 {offsets = [0, 32], sizes = [1, 32], strides = [1, 1]} : vector<1x128xf32> to vector<1x32xf32>
    %22 = vector.extract_strided_slice %19 {offsets = [0, 64], sizes = [1, 32], strides = [1, 1]} : vector<1x128xf32> to vector<1x32xf32>
    %23 = vector.extract_strided_slice %18 {offsets = [0, 96], sizes = [1, 32], strides = [1, 1]} : vector<1x128xf32> to vector<1x32xf32>
    %24 = arith.mulf %21, %9 : vector<1x32xf32>
    %25 = arith.mulf %20, %22 : vector<1x32xf32>
    %26 = arith.addf %24, %25 : vector<1x32xf32>
    %27 = math.tanh %26 : vector<1x32xf32>
    %28 = arith.mulf %23, %27 : vector<1x32xf32>
    %29 = arith.index_cast %c0_i32 : i32 to index
    %c0_14 = arith.constant 0 : index
    %30 = vector.load %arg8[%29, %c0_14] : memref<8x32xf32, #tpu.memory_space<vmem>>, vector<1x32xf32>
    tpu.vector_store %arg8[%29, %c0_14], %28 {strides = array<i32>} : memref<8x32xf32, #tpu.memory_space<vmem>>, vector<1x32xf32>,
    %c1_i32 = arith.constant 1 : i32
    %31 = arith.index_cast %c1_i32 : i32 to index
    %c0_15 = arith.constant 0 : index
    %32 = vector.load %arg7[%31, %c0_15] : memref<8x128xf32, #tpu.memory_space<vmem>>, vector<1x128xf32>
    %cst_16 = arith.constant dense<0.000000e+00> : vector<1x128xf32>
    %33 = tpu.matmul %28, %7, %cst_16 {dimension_numbers = #tpu.dot_dimension_numbers<[1], [0], [0], [1], [0, 0, 1, 1], [], []>} : vector<1x32xf32>, vector<32x128xf32>, vector<1x128xf32> -> vector<1x128xf32>
    %34 = arith.addf %32, %33 : vector<1x128xf32>
    %35 = arith.negf %34 : vector<1x128xf32>
    %36 = math.exp %35 : vector<1x128xf32>
    %cst_17 = arith.constant 1.000000e+00 : f32
    %37 = vector.broadcast %cst_17 : f32 to vector<1x128xf32>
    %38 = arith.addf %37, %36 : vector<1x128xf32>
    %39 = arith.divf %37, %38 : vector<1x128xf32>
    %40 = math.tanh %34 : vector<1x128xf32>
    %41 = vector.extract_strided_slice %39 {offsets = [0, 0], sizes = [1, 32], strides = [1, 1]} : vector<1x128xf32> to vector<1x32xf32>
    %42 = vector.extract_strided_slice %39 {offsets = [0, 32], sizes = [1, 32], strides = [1, 1]} : vector<1x128xf32> to vector<1x32xf32>
    %43 = vector.extract_strided_slice %40 {offsets = [0, 64], sizes = [1, 32], strides = [1, 1]} : vector<1x128xf32> to vector<1x32xf32>
    %44 = vector.extract_strided_slice %39 {offsets = [0, 96], sizes = [1, 32], strides = [1, 1]} : vector<1x128xf32> to vector<1x32xf32>
    %45 = arith.mulf %42, %26 : vector<1x32xf32>
    %46 = arith.mulf %41, %43 : vector<1x32xf32>
    %47 = arith.addf %45, %46 : vector<1x32xf32>
    %48 = math.tanh %47 : vector<1x32xf32>
    %49 = arith.mulf %44, %48 : vector<1x32xf32>
    %50 = arith.index_cast %c1_i32 : i32 to index
    %c0_18 = arith.constant 0 : index
    %51 = vector.load %arg8[%50, %c0_18] : memref<8x32xf32, #tpu.memory_space<vmem>>, vector<1x32xf32>
    tpu.vector_store %arg8[%50, %c0_18], %49 {strides = array<i32>} : memref<8x32xf32, #tpu.memory_space<vmem>>, vector<1x32xf32>,
    %c2_i32 = arith.constant 2 : i32
    %52 = arith.index_cast %c2_i32 : i32 to index
    %c0_19 = arith.constant 0 : index
    %53 = vector.load %arg7[%52, %c0_19] : memref<8x128xf32, #tpu.memory_space<vmem>>, vector<1x128xf32>
    %cst_20 = arith.constant dense<0.000000e+00> : vector<1x128xf32>
    %54 = tpu.matmul %49, %7, %cst_20 {dimension_numbers = #tpu.dot_dimension_numbers<[1], [0], [0], [1], [0, 0, 1, 1], [], []>} : vector<1x32xf32>, vector<32x128xf32>, vector<1x128xf32> -> vector<1x128xf32>
    %55 = arith.addf %53, %54 : vector<1x128xf32>
    %56 = arith.negf %55 : vector<1x128xf32>
    %57 = math.exp %56 : vector<1x128xf32>
    %cst_21 = arith.constant 1.000000e+00 : f32
    %58 = vector.broadcast %cst_21 : f32 to vector<1x128xf32>
    %59 = arith.addf %58, %57 : vector<1x128xf32>
    %60 = arith.divf %58, %59 : vector<1x128xf32>
    %61 = math.tanh %55 : vector<1x128xf32>
    %62 = vector.extract_strided_slice %60 {offsets = [0, 0], sizes = [1, 32], strides = [1, 1]} : vector<1x128xf32> to vector<1x32xf32>
    %63 = vector.extract_strided_slice %60 {offsets = [0, 32], sizes = [1, 32], strides = [1, 1]} : vector<1x128xf32> to vector<1x32xf32>
    %64 = vector.extract_strided_slice %61 {offsets = [0, 64], sizes = [1, 32], strides = [1, 1]} : vector<1x128xf32> to vector<1x32xf32>
    %65 = vector.extract_strided_slice %60 {offsets = [0, 96], sizes = [1, 32], strides = [1, 1]} : vector<1x128xf32> to vector<1x32xf32>
    %66 = arith.mulf %63, %47 : vector<1x32xf32>
    %67 = arith.mulf %62, %64 : vector<1x32xf32>
    %68 = arith.addf %66, %67 : vector<1x32xf32>
    %69 = math.tanh %68 : vector<1x32xf32>
    %70 = arith.mulf %65, %69 : vector<1x32xf32>
    %71 = arith.index_cast %c2_i32 : i32 to index
    %c0_22 = arith.constant 0 : index
    %72 = vector.load %arg8[%71, %c0_22] : memref<8x32xf32, #tpu.memory_space<vmem>>, vector<1x32xf32>
    tpu.vector_store %arg8[%71, %c0_22], %70 {strides = array<i32>} : memref<8x32xf32, #tpu.memory_space<vmem>>, vector<1x32xf32>,
    %c3_i32 = arith.constant 3 : i32
    %73 = arith.index_cast %c3_i32 : i32 to index
    %c0_23 = arith.constant 0 : index
    %74 = vector.load %arg7[%73, %c0_23] : memref<8x128xf32, #tpu.memory_space<vmem>>, vector<1x128xf32>
    %cst_24 = arith.constant dense<0.000000e+00> : vector<1x128xf32>
    %75 = tpu.matmul %70, %7, %cst_24 {dimension_numbers = #tpu.dot_dimension_numbers<[1], [0], [0], [1], [0, 0, 1, 1], [], []>} : vector<1x32xf32>, vector<32x128xf32>, vector<1x128xf32> -> vector<1x128xf32>
    %76 = arith.addf %74, %75 : vector<1x128xf32>
    %77 = arith.negf %76 : vector<1x128xf32>
    %78 = math.exp %77 : vector<1x128xf32>
    %cst_25 = arith.constant 1.000000e+00 : f32
    %79 = vector.broadcast %cst_25 : f32 to vector<1x128xf32>
    %80 = arith.addf %79, %78 : vector<1x128xf32>
    %81 = arith.divf %79, %80 : vector<1x128xf32>
    %82 = math.tanh %76 : vector<1x128xf32>
    %83 = vector.extract_strided_slice %81 {offsets = [0, 0], sizes = [1, 32], strides = [1, 1]} : vector<1x128xf32> to vector<1x32xf32>
    %84 = vector.extract_strided_slice %81 {offsets = [0, 32], sizes = [1, 32], strides = [1, 1]} : vector<1x128xf32> to vector<1x32xf32>
    %85 = vector.extract_strided_slice %82 {offsets = [0, 64], sizes = [1, 32], strides = [1, 1]} : vector<1x128xf32> to vector<1x32xf32>
    %86 = vector.extract_strided_slice %81 {offsets = [0, 96], sizes = [1, 32], strides = [1, 1]} : vector<1x128xf32> to vector<1x32xf32>
    %87 = arith.mulf %84, %68 : vector<1x32xf32>
    %88 = arith.mulf %83, %85 : vector<1x32xf32>
    %89 = arith.addf %87, %88 : vector<1x32xf32>
    %90 = math.tanh %89 : vector<1x32xf32>
    %91 = arith.mulf %86, %90 : vector<1x32xf32>
    %92 = arith.index_cast %c3_i32 : i32 to index
    %c0_26 = arith.constant 0 : index
    %93 = vector.load %arg8[%92, %c0_26] : memref<8x32xf32, #tpu.memory_space<vmem>>, vector<1x32xf32>
    tpu.vector_store %arg8[%92, %c0_26], %91 {strides = array<i32>} : memref<8x32xf32, #tpu.memory_space<vmem>>, vector<1x32xf32>,
    %c4_i32 = arith.constant 4 : i32
    %94 = arith.index_cast %c4_i32 : i32 to index
    %c0_27 = arith.constant 0 : index
    %95 = vector.load %arg7[%94, %c0_27] : memref<8x128xf32, #tpu.memory_space<vmem>>, vector<1x128xf32>
    %cst_28 = arith.constant dense<0.000000e+00> : vector<1x128xf32>
    %96 = tpu.matmul %91, %7, %cst_28 {dimension_numbers = #tpu.dot_dimension_numbers<[1], [0], [0], [1], [0, 0, 1, 1], [], []>} : vector<1x32xf32>, vector<32x128xf32>, vector<1x128xf32> -> vector<1x128xf32>
    %97 = arith.addf %95, %96 : vector<1x128xf32>
    %98 = arith.negf %97 : vector<1x128xf32>
    %99 = math.exp %98 : vector<1x128xf32>
    %cst_29 = arith.constant 1.000000e+00 : f32
    %100 = vector.broadcast %cst_29 : f32 to vector<1x128xf32>
    %101 = arith.addf %100, %99 : vector<1x128xf32>
    %102 = arith.divf %100, %101 : vector<1x128xf32>
    %103 = math.tanh %97 : vector<1x128xf32>
    %104 = vector.extract_strided_slice %102 {offsets = [0, 0], sizes = [1, 32], strides = [1, 1]} : vector<1x128xf32> to vector<1x32xf32>
    %105 = vector.extract_strided_slice %102 {offsets = [0, 32], sizes = [1, 32], strides = [1, 1]} : vector<1x128xf32> to vector<1x32xf32>
    %106 = vector.extract_strided_slice %103 {offsets = [0, 64], sizes = [1, 32], strides = [1, 1]} : vector<1x128xf32> to vector<1x32xf32>
    %107 = vector.extract_strided_slice %102 {offsets = [0, 96], sizes = [1, 32], strides = [1, 1]} : vector<1x128xf32> to vector<1x32xf32>
    %108 = arith.mulf %105, %89 : vector<1x32xf32>
    %109 = arith.mulf %104, %106 : vector<1x32xf32>
    %110 = arith.addf %108, %109 : vector<1x32xf32>
    %111 = math.tanh %110 : vector<1x32xf32>
    %112 = arith.mulf %107, %111 : vector<1x32xf32>
    %113 = arith.index_cast %c4_i32 : i32 to index
    %c0_30 = arith.constant 0 : index
    %114 = vector.load %arg8[%113, %c0_30] : memref<8x32xf32, #tpu.memory_space<vmem>>, vector<1x32xf32>
    tpu.vector_store %arg8[%113, %c0_30], %112 {strides = array<i32>} : memref<8x32xf32, #tpu.memory_space<vmem>>, vector<1x32xf32>,
    %c5_i32 = arith.constant 5 : i32
    %115 = arith.index_cast %c5_i32 : i32 to index
    %c0_31 = arith.constant 0 : index
    %116 = vector.load %arg7[%115, %c0_31] : memref<8x128xf32, #tpu.memory_space<vmem>>, vector<1x128xf32>
    %cst_32 = arith.constant dense<0.000000e+00> : vector<1x128xf32>
    %117 = tpu.matmul %112, %7, %cst_32 {dimension_numbers = #tpu.dot_dimension_numbers<[1], [0], [0], [1], [0, 0, 1, 1], [], []>} : vector<1x32xf32>, vector<32x128xf32>, vector<1x128xf32> -> vector<1x128xf32>
    %118 = arith.addf %116, %117 : vector<1x128xf32>
    %119 = arith.negf %118 : vector<1x128xf32>
    %120 = math.exp %119 : vector<1x128xf32>
    %cst_33 = arith.constant 1.000000e+00 : f32
    %121 = vector.broadcast %cst_33 : f32 to vector<1x128xf32>
    %122 = arith.addf %121, %120 : vector<1x128xf32>
    %123 = arith.divf %121, %122 : vector<1x128xf32>
    %124 = math.tanh %118 : vector<1x128xf32>
    %125 = vector.extract_strided_slice %123 {offsets = [0, 0], sizes = [1, 32], strides = [1, 1]} : vector<1x128xf32> to vector<1x32xf32>
    %126 = vector.extract_strided_slice %123 {offsets = [0, 32], sizes = [1, 32], strides = [1, 1]} : vector<1x128xf32> to vector<1x32xf32>
    %127 = vector.extract_strided_slice %124 {offsets = [0, 64], sizes = [1, 32], strides = [1, 1]} : vector<1x128xf32> to vector<1x32xf32>
    %128 = vector.extract_strided_slice %123 {offsets = [0, 96], sizes = [1, 32], strides = [1, 1]} : vector<1x128xf32> to vector<1x32xf32>
    %129 = arith.mulf %126, %110 : vector<1x32xf32>
    %130 = arith.mulf %125, %127 : vector<1x32xf32>
    %131 = arith.addf %129, %130 : vector<1x32xf32>
    %132 = math.tanh %131 : vector<1x32xf32>
    %133 = arith.mulf %128, %132 : vector<1x32xf32>
    %134 = arith.index_cast %c5_i32 : i32 to index
    %c0_34 = arith.constant 0 : index
    %135 = vector.load %arg8[%134, %c0_34] : memref<8x32xf32, #tpu.memory_space<vmem>>, vector<1x32xf32>
    tpu.vector_store %arg8[%134, %c0_34], %133 {strides = array<i32>} : memref<8x32xf32, #tpu.memory_space<vmem>>, vector<1x32xf32>,
    %c6_i32 = arith.constant 6 : i32
    %136 = arith.index_cast %c6_i32 : i32 to index
    %c0_35 = arith.constant 0 : index
    %137 = vector.load %arg7[%136, %c0_35] : memref<8x128xf32, #tpu.memory_space<vmem>>, vector<1x128xf32>
    %cst_36 = arith.constant dense<0.000000e+00> : vector<1x128xf32>
    %138 = tpu.matmul %133, %7, %cst_36 {dimension_numbers = #tpu.dot_dimension_numbers<[1], [0], [0], [1], [0, 0, 1, 1], [], []>} : vector<1x32xf32>, vector<32x128xf32>, vector<1x128xf32> -> vector<1x128xf32>
    %139 = arith.addf %137, %138 : vector<1x128xf32>
    %140 = arith.negf %139 : vector<1x128xf32>
    %141 = math.exp %140 : vector<1x128xf32>
    %cst_37 = arith.constant 1.000000e+00 : f32
    %142 = vector.broadcast %cst_37 : f32 to vector<1x128xf32>
    %143 = arith.addf %142, %141 : vector<1x128xf32>
    %144 = arith.divf %142, %143 : vector<1x128xf32>
    %145 = math.tanh %139 : vector<1x128xf32>
    %146 = vector.extract_strided_slice %144 {offsets = [0, 0], sizes = [1, 32], strides = [1, 1]} : vector<1x128xf32> to vector<1x32xf32>
    %147 = vector.extract_strided_slice %144 {offsets = [0, 32], sizes = [1, 32], strides = [1, 1]} : vector<1x128xf32> to vector<1x32xf32>
    %148 = vector.extract_strided_slice %145 {offsets = [0, 64], sizes = [1, 32], strides = [1, 1]} : vector<1x128xf32> to vector<1x32xf32>
    %149 = vector.extract_strided_slice %144 {offsets = [0, 96], sizes = [1, 32], strides = [1, 1]} : vector<1x128xf32> to vector<1x32xf32>
    %150 = arith.mulf %147, %131 : vector<1x32xf32>
    %151 = arith.mulf %146, %148 : vector<1x32xf32>
    %152 = arith.addf %150, %151 : vector<1x32xf32>
    %153 = math.tanh %152 : vector<1x32xf32>
    %154 = arith.mulf %149, %153 : vector<1x32xf32>
    %155 = arith.index_cast %c6_i32 : i32 to index
    %c0_38 = arith.constant 0 : index
    %156 = vector.load %arg8[%155, %c0_38] : memref<8x32xf32, #tpu.memory_space<vmem>>, vector<1x32xf32>
    tpu.vector_store %arg8[%155, %c0_38], %154 {strides = array<i32>} : memref<8x32xf32, #tpu.memory_space<vmem>>, vector<1x32xf32>,
    %c7_i32 = arith.constant 7 : i32
    %157 = arith.index_cast %c7_i32 : i32 to index
    %c0_39 = arith.constant 0 : index
    %158 = vector.load %arg7[%157, %c0_39] : memref<8x128xf32, #tpu.memory_space<vmem>>, vector<1x128xf32>
    %cst_40 = arith.constant dense<0.000000e+00> : vector<1x128xf32>
    %159 = tpu.matmul %154, %7, %cst_40 {dimension_numbers = #tpu.dot_dimension_numbers<[1], [0], [0], [1], [0, 0, 1, 1], [], []>} : vector<1x32xf32>, vector<32x128xf32>, vector<1x128xf32> -> vector<1x128xf32>
    %160 = arith.addf %158, %159 : vector<1x128xf32>
    %161 = arith.negf %160 : vector<1x128xf32>
    %162 = math.exp %161 : vector<1x128xf32>
    %cst_41 = arith.constant 1.000000e+00 : f32
    %163 = vector.broadcast %cst_41 : f32 to vector<1x128xf32>
    %164 = arith.addf %163, %162 : vector<1x128xf32>
    %165 = arith.divf %163, %164 : vector<1x128xf32>
    %166 = math.tanh %160 : vector<1x128xf32>
    %167 = vector.extract_strided_slice %165 {offsets = [0, 0], sizes = [1, 32], strides = [1, 1]} : vector<1x128xf32> to vector<1x32xf32>
    %168 = vector.extract_strided_slice %165 {offsets = [0, 32], sizes = [1, 32], strides = [1, 1]} : vector<1x128xf32> to vector<1x32xf32>
    %169 = vector.extract_strided_slice %166 {offsets = [0, 64], sizes = [1, 32], strides = [1, 1]} : vector<1x128xf32> to vector<1x32xf32>
    %170 = vector.extract_strided_slice %165 {offsets = [0, 96], sizes = [1, 32], strides = [1, 1]} : vector<1x128xf32> to vector<1x32xf32>
    %171 = arith.mulf %168, %152 : vector<1x32xf32>
    %172 = arith.mulf %167, %169 : vector<1x32xf32>
    %173 = arith.addf %171, %172 : vector<1x32xf32>
    %174 = math.tanh %173 : vector<1x32xf32>
    %175 = arith.mulf %170, %174 : vector<1x32xf32>
    %176 = arith.index_cast %c7_i32 : i32 to index
    %c0_42 = arith.constant 0 : index
    %177 = vector.load %arg8[%176, %c0_42] : memref<8x32xf32, #tpu.memory_space<vmem>>, vector<1x32xf32>
    tpu.vector_store %arg8[%176, %c0_42], %175 {strides = array<i32>} : memref<8x32xf32, #tpu.memory_space<vmem>>, vector<1x32xf32>,
    %c8_i32 = arith.constant 8 : i32
    %c0_43 = arith.constant 0 : index
    %c0_44 = arith.constant 0 : index
    %178 = vector.load %arg8[%c0_43, %c0_44] : memref<8x32xf32, #tpu.memory_space<vmem>>, vector<8x32xf32>
    %c0_45 = arith.constant 0 : index
    %c0_46 = arith.constant 0 : index
    %179 = vector.load %arg4[%c0_45, %c0_46] : memref<32x2xf32, #tpu.memory_space<vmem>>, vector<32x2xf32>
    %cst_47 = arith.constant dense<0.000000e+00> : vector<8x2xf32>
    %180 = tpu.matmul %178, %179, %cst_47 {dimension_numbers = #tpu.dot_dimension_numbers<[1], [0], [0], [1], [0, 0, 1, 1], [], []>} : vector<8x32xf32>, vector<32x2xf32>, vector<8x2xf32> -> vector<8x2xf32>
    %c0_48 = arith.constant 0 : index
    %c0_49 = arith.constant 0 : index
    %181 = vector.load %arg5[%c0_48, %c0_49] : memref<1x2xf32, #tpu.memory_space<vmem>>, vector<1x2xf32>
    %182 = vector.broadcast %181 : vector<1x2xf32> to vector<8x2xf32>
    %183 = arith.addf %180, %182 : vector<8x2xf32>
    %c0_50 = arith.constant 0 : index
    %c0_51 = arith.constant 0 : index
    %184 = vector.load %arg6[%c0_50, %c0_51] : memref<8x2xf32, #tpu.memory_space<vmem>>, vector<8x2xf32>
    tpu.vector_store %arg6[%c0_50, %c0_51], %183 {strides = array<i32>} : memref<8x2xf32, #tpu.memory_space<vmem>>, vector<8x2xf32>,
    return
  }
}

</mosaic_0001>

<bundles_post_ra>
// kernel: tpu_custom_call.1
= control target key start
LH: loop header
LB: loop body
LE: loop exit
PB: predicated region body
PF: predicated region fallthrough
CT: control target
= control target key end

     0   :  { %vm33_vm0 = vcmask 1043456   ;;  %vm29_vm1 = vcmask 31744   ;;  %v718_v6 = vmov 0.0   ;;  %s719_s8 = smov 64   ;;  %vm129_vm6 = vcmask 253952   ;;  %s843_s1 = inlined_call_operand.vmem [shape: f32[4,128], index: 1, kind: input, shape index: {}]   ;;  %s844_s0 = inlined_call_operand.vmem [shape: f32[8,4], index: 0, kind: input, shape index: {}]   ;;  %s845_s2 = inlined_call_operand.vmem [shape: f32[32,128], index: 2, kind: input, shape index: {}]   ;;  %s846_s3 = inlined_call_operand.vmem [shape: f32[1,128], index: 3, kind: input, shape index: {}]   ;;  %s847_s5 = inlined_call_operand.vmem [shape: f32[1,2], index: 5, kind: input, shape index: {}]   ;;  %s848_s4 = inlined_call_operand.vmem [shape: f32[32,2], index: 4, kind: input, shape index: {}]   ;;  %s849_s6 = inlined_call_operand.vmem [shape: f32[8,2], index: 6, kind: output, shape index: {}]  }
   0x1   :  { %v24_v0 = vld [vmem:[%s843_s1] sm:$0xf]  ;;  %v61_v2 = vld [vmem:[%s845_s2 + $0x18] sm:$0xff]  ;;  %v60_v3 = vld [vmem:[%s845_s2 + $0x10] sm:$0xff]  ;;  %vm63_vm7 = vcmask 261120  }
   0x2   :  { %v23_v1 = vld [vmem:[%s844_s0] sm:$0xff]  ;;  %631 = vmatpush.msk.msra.mxu0 %vm33_vm0, %v24_v0  ;;  %79 = vmatpush.msra.mxu1 %v61_v2  ;;  %v59_v4 = vld [vmem:[%s845_s2 + $0x8] sm:$0xff] }
   0x3   :  { %632 = vmatmul.msk.f32.vlgmr.msra.gmra.mxu0 %vm29_vm1, %v23_v1  ;;  %146 = vmatpush.msra.mxu2 %v61_v2  ;;  %v58_v5 = vld [vmem:[%s845_s2] sm:$0xff] }
   0x4   :  { %80 = vmatpush.msra.mxu1 %v60_v3  ;;  %212 = vmatpush.msra.mxu3 %v61_v2  ;;  %v652_v7 = vld [vmem:[%s846_s3] ss:$0 sm:$0xff]  ;;  %s720_s3 = smov 32  }
   0x5   :  { %147 = vmatpush.msra.mxu2 %v60_v3  ;;  %278 = vmatpush.msrb.mxu0 %v61_v2 }
   0x6   :  { %81 = vmatpush.msra.mxu1 %v59_v4  ;;  %213 = vmatpush.msra.mxu3 %v60_v3 }
   0x7   :  { %148 = vmatpush.msra.mxu2 %v59_v4  ;;  %279 = vmatpush.msrb.mxu0 %v60_v3 }
   0x8   :  { %82 = vmatpush.msra.mxu1 %v58_v5  ;;  %214 = vmatpush.msra.mxu3 %v59_v4 }
   0x9   :  { %83 = vmatmul.f32.vlgmr.msra.gmra.mxu1 %v718_v6  ;;  %149 = vmatpush.msra.mxu2 %v58_v5 }
   0xa   :  { %215 = vmatpush.msra.mxu3 %v58_v5  ;;  %280 = vmatpush.msrb.mxu0 %v59_v4 }
   0xb   :  { %344 = vmatpush.msrb.mxu1 %v61_v2  ;;  %410 = vmatpush.msrb.mxu2 %v61_v2 }
   0xc   :  { %281 = vmatpush.msrb.mxu0 %v58_v5  ;;  %476 = vmatpush.msrb.mxu3 %v61_v2 }
   0xd   :  { %345 = vmatpush.msrb.mxu1 %v60_v3  ;;  %411 = vmatpush.msrb.mxu2 %v60_v3 }
   0xe   :  { %477 = vmatpush.msrb.mxu3 %v60_v3  ;;  %542 = vmatpush.msra.mxu0 %v61_v2 }
   0xf   :  { %346 = vmatpush.msrb.mxu1 %v59_v4  ;;  %412 = vmatpush.msrb.mxu2 %v59_v4 }
  0x10   :  { %478 = vmatpush.msrb.mxu3 %v59_v4  ;;  %543 = vmatpush.msra.mxu0 %v60_v3 }
  0x11   :  { %347 = vmatpush.msrb.mxu1 %v58_v5  ;;  %413 = vmatpush.msrb.mxu2 %v58_v5 }
  0x12   :  { %479 = vmatpush.msrb.mxu3 %v58_v5  ;;  %544 = vmatpush.msra.mxu0 %v59_v4 }
  0x14   :  { %545 = vmatpush.msra.mxu0 %v58_v5 }
  0x80   :  { %v54_v8 = vpop.f32.mrf.mxu0 }
  0x81   :  { %v55_v9 = vadd.f32 %v652_v7, %v54_v8 }
  0x83   :  { %57 = vst [vmem:[#allocation2] sm:$0xff] %v55_v9 }
  0x86   :  { %v84_v10 = vpop.f32.mrf.mxu1 }
  0x8a   :  { %v62_v11 = vld [vmem:[#allocation2] sm:$0x1]  ;;  %v131_v36 = vld [vmem:[#allocation2 + $0x1] sm:$0x1]  ;;  %v197_v62 = vld [vmem:[#allocation2 + $0x2] sm:$0x1] }
  0x8b   :  { %v87_v12 = vadd.f32 %v84_v10, %v62_v11 }
  0x8d   :  { %654 = vtanh.f32 %v87_v12  ;;  %v633_v14 = vmul.f32 -1.442695, %v87_v12 }
  0x8f   :  { %656 = vpow2.f32 %v633_v14 }
  0x93   :  { %v655_v13 = vpop.eup %654 }
  0x94   :  { %110 = vrot.lane.b32.xlu0 %v655_v13, %s719_s8 }
  0x95   :  { %v657_v15 = vpop.eup %656 }
  0x96   :  { %v91_v16 = vadd.f32 1.0, %v657_v15 }
  0x98   :  { %658 = vrcp.f32 %v91_v16  ;;  %v103_v22 = vand.u32 2147483648, %v91_v16  ;;  %vm97_vm3 = vweird.f32 %v91_v16  ;;  %v101_v23 = vand.u32 2147483647, %v91_v16 }
  0x9a   :  { %v104_v25 = vor.u32 1.1754944e-38, %v103_v22  ;;  %vm102_vm5 = vcmp.eq.f32.partialorder %v101_v23, 8.507059e+37 }
  0x9e   :  { %v659_v17 = vpop.eup %658 }
  0x9f   :  { %v93_v18 = vmul.f32 %v659_v17, %v91_v16  ;;  %vm98_vm2 = vweird.f32 %v659_v17 }
  0xa0   :  { %vm99_vm4 = vmor %vm97_vm3, %vm98_vm2 }
  0xa1   :  { %v94_v19 = vsub.f32 1.0, %v93_v18 }
  0xa3   :  { %v95_v20 = vmul.f32 %v659_v17, %v94_v19 }
  0xa5   :  { %v96_v21 = vadd.f32 %v659_v17, %v95_v20 }
  0xa7   :  { %v100_v24 = vsel %vm99_vm4, %v659_v17, %v96_v21 }
  0xa8   :  { %v105_v27 = vsel %vm102_vm5, %v104_v25, %v100_v24  ;;  %v263_v24 = vld [vmem:[#allocation2 + $0x3] sm:$0x1] }
  0xa9   :  { %v108_v29 = vmul.f32 0.0, %v105_v27 }
 0x106   :  { %v111_v26 = vpop.permute.xlu0 %110 }
 0x107   :  { %v113_v28 = vmul.f32 %v111_v26, %v105_v27 }
 0x109   :  { %115 = vrot.lane.b32.xlu0 %v113_v28, %s720_s3 }
 0x17b   :  { %v116_v30 = vpop.permute.xlu0 %115 }
 0x17c   :  { %v118_v31 = vadd.f32 %v116_v30, %v108_v29 }
 0x17e   :  { %660 = vtanh.f32 %v118_v31 }
 0x184   :  { %v661_v32 = vpop.eup %660 }
 0x185   :  { %121 = vrot.lane.b32.xlu1 %v661_v32, %s719_s8 }
 0x1f7   :  { %v122_v33 = vpop.permute.xlu1 %121 }
 0x1f8   :  { %v124_v34 = vmul.f32 %v122_v33, %v105_v27 }
 0x1fa   :  { %126 = vrot.lane.b32.xlu1 %v124_v34, %s720_s3 }
 0x26c   :  { %v127_v35 = vpop.permute.xlu1 %126 }
 0x26d   :  { %130 = vst.msk [vmem:[#allocation3] sm:$0x1] %vm129_vm6, %v127_v35  ;;  %634 = vmatmul.msk.f32.vlgmr.msra.gmra.mxu2 %vm63_vm7, %v127_v35 }
 0x2f0   :  { %v151_v37 = vpop.f32.mrf.mxu2 }
 0x2f1   :  { %v154_v38 = vadd.f32 %v151_v37, %v131_v36 }
 0x2f3   :  { %662 = vtanh.f32 %v154_v38  ;;  %v635_v40 = vmul.f32 -1.442695, %v154_v38 }
 0x2f5   :  { %664 = vpow2.f32 %v635_v40 }
 0x2f9   :  { %v663_v39 = vpop.eup %662 }
 0x2fa   :  { %177 = vrot.lane.b32.xlu2 %v663_v39, %s719_s8 }
 0x2fb   :  { %v665_v41 = vpop.eup %664 }
 0x2fc   :  { %v158_v42 = vadd.f32 1.0, %v665_v41 }
 0x2fe   :  { %666 = vrcp.f32 %v158_v42  ;;  %v170_v48 = vand.u32 2147483648, %v158_v42  ;;  %vm164_vm9 = vweird.f32 %v158_v42  ;;  %v168_v49 = vand.u32 2147483647, %v158_v42 }
 0x300   :  { %v171_v51 = vor.u32 1.1754944e-38, %v170_v48  ;;  %vm169_vm11 = vcmp.eq.f32.partialorder %v168_v49, 8.507059e+37 }
 0x304   :  { %v667_v43 = vpop.eup %666 }
 0x305   :  { %v160_v44 = vmul.f32 %v667_v43, %v158_v42  ;;  %vm165_vm8 = vweird.f32 %v667_v43 }
 0x306   :  { %vm166_vm10 = vmor %vm164_vm9, %vm165_vm8 }
 0x307   :  { %v161_v45 = vsub.f32 1.0, %v160_v44 }
 0x309   :  { %v162_v46 = vmul.f32 %v667_v43, %v161_v45 }
 0x30b   :  { %v163_v47 = vadd.f32 %v667_v43, %v162_v46 }
 0x30d   :  { %v167_v50 = vsel %vm166_vm10, %v667_v43, %v163_v47 }
 0x30e   :  { %v172_v53 = vsel %vm169_vm11, %v171_v51, %v167_v50  ;;  %v329_v50 = vld [vmem:[#allocation2 + $0x4] sm:$0x1] }
 0x30f   :  { %v175_v55 = vmul.f32 %v172_v53, %v118_v31 }
 0x354   :  { %v178_v52 = vpop.permute.xlu2 %177 }
 0x355   :  { %v180_v54 = vmul.f32 %v178_v52, %v172_v53 }
 0x357   :  { %182 = vrot.lane.b32.xlu2 %v180_v54, %s720_s3 }
 0x3b1   :  { %v183_v56 = vpop.permute.xlu2 %182 }
 0x3b2   :  { %v185_v57 = vadd.f32 %v183_v56, %v175_v55 }
 0x3b4   :  { %668 = vtanh.f32 %v185_v57 }
 0x3ba   :  { %v669_v58 = vpop.eup %668 }
 0x3bb   :  { %188 = vrot.lane.b32.xlu0 %v669_v58, %s719_s8 }
 0x42d   :  { %v189_v59 = vpop.permute.xlu0 %188 }
 0x42e   :  { %v191_v60 = vmul.f32 %v189_v59, %v172_v53 }
 0x430   :  { %193 = vrot.lane.b32.xlu1 %v191_v60, %s720_s3 }
 0x4a2   :  { %v194_v61 = vpop.permute.xlu1 %193 }
 0x4a3   :  { %196 = vst.msk [vmem:[#allocation3 + $0x1] sm:$0x1] %vm129_vm6, %v194_v61  ;;  %636 = vmatmul.msk.f32.vlgmr.msra.gmra.mxu3 %vm63_vm7, %v194_v61 }
 0x526   :  { %v217_v63 = vpop.f32.mrf.mxu3 }
 0x527   :  { %v220_v0 = vadd.f32 %v217_v63, %v197_v62 }
 0x529   :  { %670 = vtanh.f32 %v220_v0  ;;  %v637_v2 = vmul.f32 -1.442695, %v220_v0 }
 0x52b   :  { %672 = vpow2.f32 %v637_v2 }
 0x52f   :  { %v671_v1 = vpop.eup %670 }
 0x530   :  { %243 = vrot.lane.b32.xlu2 %v671_v1, %s719_s8 }
 0x531   :  { %v673_v3 = vpop.eup %672 }
 0x532   :  { %v224_v4 = vadd.f32 1.0, %v673_v3 }
 0x534   :  { %674 = vrcp.f32 %v224_v4  ;;  %v236_v10 = vand.u32 2147483648, %v224_v4  ;;  %vm230_vm13 = vweird.f32 %v224_v4  ;;  %v234_v11 = vand.u32 2147483647, %v224_v4 }
 0x536   :  { %v237_v13 = vor.u32 1.1754944e-38, %v236_v10  ;;  %vm235_vm15 = vcmp.eq.f32.partialorder %v234_v11, 8.507059e+37 }
 0x53a   :  { %v675_v5 = vpop.eup %674 }
 0x53b   :  { %v226_v6 = vmul.f32 %v675_v5, %v224_v4  ;;  %vm231_vm12 = vweird.f32 %v675_v5 }
 0x53c   :  { %vm232_vm14 = vmor %vm230_vm13, %vm231_vm12 }
 0x53d   :  { %v227_v7 = vsub.f32 1.0, %v226_v6 }
 0x53f   :  { %v228_v8 = vmul.f32 %v675_v5, %v227_v7 }
 0x541   :  { %v229_v9 = vadd.f32 %v675_v5, %v228_v8 }
 0x543   :  { %v233_v12 = vsel %vm232_vm14, %v675_v5, %v229_v9 }
 0x544   :  { %v238_v15 = vsel %vm235_vm15, %v237_v13, %v233_v12  ;;  %v395_v12 = vld [vmem:[#allocation2 + $0x5] sm:$0x1] }
 0x545   :  { %v241_v17 = vmul.f32 %v238_v15, %v185_v57 }
 0x58a   :  { %v244_v14 = vpop.permute.xlu2 %243 }
 0x58b   :  { %v246_v16 = vmul.f32 %v244_v14, %v238_v15 }
 0x58d   :  { %248 = vrot.lane.b32.xlu0 %v246_v16, %s720_s3 }
 0x5ff   :  { %v249_v18 = vpop.permute.xlu0 %248 }
 0x600   :  { %v251_v19 = vadd.f32 %v249_v18, %v241_v17 }
 0x602   :  { %676 = vtanh.f32 %v251_v19 }
 0x608   :  { %v677_v20 = vpop.eup %676 }
 0x609   :  { %254 = vrot.lane.b32.xlu1 %v677_v20, %s719_s8 }
 0x67b   :  { %v255_v21 = vpop.permute.xlu1 %254 }
 0x67c   :  { %v257_v22 = vmul.f32 %v255_v21, %v238_v15 }
 0x67e   :  { %259 = vrot.lane.b32.xlu2 %v257_v22, %s720_s3 }
 0x6d8   :  { %v260_v23 = vpop.permute.xlu2 %259 }
 0x6d9   :  { %262 = vst.msk [vmem:[#allocation3 + $0x2] sm:$0x1] %vm129_vm6, %v260_v23  ;;  %638 = vmatmul.msk.f32.vlgmr.msrb.gmra.mxu0 %vm63_vm7, %v260_v23 }
 0x756   :  { %v283_v25 = vpop.f32.mrf.mxu0 }
 0x757   :  { %v286_v26 = vadd.f32 %v283_v25, %v263_v24 }
 0x759   :  { %678 = vtanh.f32 %v286_v26  ;;  %v639_v28 = vmul.f32 -1.442695, %v286_v26 }
 0x75b   :  { %680 = vpow2.f32 %v639_v28 }
 0x75f   :  { %v679_v27 = vpop.eup %678 }
 0x760   :  { %309 = vrot.lane.b32.xlu0 %v679_v27, %s719_s8 }
 0x761   :  { %v681_v29 = vpop.eup %680 }
 0x762   :  { %v290_v30 = vadd.f32 1.0, %v681_v29 }
 0x764   :  { %682 = vrcp.f32 %v290_v30  ;;  %v302_v36 = vand.u32 2147483648, %v290_v30  ;;  %vm296_vm1 = vweird.f32 %v290_v30  ;;  %v300_v37 = vand.u32 2147483647, %v290_v30 }
 0x766   :  { %v303_v39 = vor.u32 1.1754944e-38, %v302_v36  ;;  %vm301_vm3 = vcmp.eq.f32.partialorder %v300_v37, 8.507059e+37 }
 0x76a   :  { %v683_v31 = vpop.eup %682 }
 0x76b   :  { %v292_v32 = vmul.f32 %v683_v31, %v290_v30  ;;  %vm297_vm0 = vweird.f32 %v683_v31 }
 0x76c   :  { %vm298_vm2 = vmor %vm296_vm1, %vm297_vm0 }
 0x76d   :  { %v293_v33 = vsub.f32 1.0, %v292_v32 }
 0x76f   :  { %v294_v34 = vmul.f32 %v683_v31, %v293_v33 }
 0x771   :  { %v295_v35 = vadd.f32 %v683_v31, %v294_v34 }
 0x773   :  { %v299_v38 = vsel %vm298_vm2, %v683_v31, %v295_v35 }
 0x774   :  { %v304_v41 = vsel %vm301_vm3, %v303_v39, %v299_v38  ;;  %v461_v38 = vld [vmem:[#allocation2 + $0x6] sm:$0x1] }
 0x775   :  { %v307_v43 = vmul.f32 %v304_v41, %v251_v19 }
 0x7d2   :  { %v310_v40 = vpop.permute.xlu0 %309 }
 0x7d3   :  { %v312_v42 = vmul.f32 %v310_v40, %v304_v41 }
 0x7d5   :  { %314 = vrot.lane.b32.xlu1 %v312_v42, %s720_s3 }
 0x847   :  { %v315_v44 = vpop.permute.xlu1 %314 }
 0x848   :  { %v317_v45 = vadd.f32 %v315_v44, %v307_v43 }
 0x84a   :  { %684 = vtanh.f32 %v317_v45 }
 0x850   :  { %v685_v46 = vpop.eup %684 }
 0x851   :  { %320 = vrot.lane.b32.xlu2 %v685_v46, %s719_s8 }
 0x8ab   :  { %v321_v47 = vpop.permute.xlu2 %320 }
 0x8ac   :  { %v323_v48 = vmul.f32 %v321_v47, %v304_v41 }
 0x8ae   :  { %325 = vrot.lane.b32.xlu0 %v323_v48, %s720_s3 }
 0x920   :  { %v326_v49 = vpop.permute.xlu0 %325 }
 0x921   :  { %328 = vst.msk [vmem:[#allocation3 + $0x3] sm:$0x1] %vm129_vm6, %v326_v49  ;;  %640 = vmatmul.msk.f32.vlgmr.msrb.gmra.mxu1 %vm63_vm7, %v326_v49 }
 0x99e   :  { %v349_v51 = vpop.f32.mrf.mxu1 }
 0x99f   :  { %v352_v52 = vadd.f32 %v349_v51, %v329_v50 }
 0x9a1   :  { %686 = vtanh.f32 %v352_v52  ;;  %v641_v54 = vmul.f32 -1.442695, %v352_v52 }
 0x9a3   :  { %688 = vpow2.f32 %v641_v54 }
 0x9a7   :  { %v687_v53 = vpop.eup %686 }
 0x9a8   :  { %375 = vrot.lane.b32.xlu1 %v687_v53, %s719_s8 }
 0x9a9   :  { %v689_v55 = vpop.eup %688 }
 0x9aa   :  { %v356_v56 = vadd.f32 1.0, %v689_v55 }
 0x9ac   :  { %690 = vrcp.f32 %v356_v56  ;;  %v368_v62 = vand.u32 2147483648, %v356_v56  ;;  %vm362_vm5 = vweird.f32 %v356_v56  ;;  %v366_v63 = vand.u32 2147483647, %v356_v56 }
 0x9ae   :  { %v369_v1 = vor.u32 1.1754944e-38, %v368_v62  ;;  %vm367_vm9 = vcmp.eq.f32.partialorder %v366_v63, 8.507059e+37 }
 0x9b2   :  { %v691_v57 = vpop.eup %690 }
 0x9b3   :  { %v358_v58 = vmul.f32 %v691_v57, %v356_v56  ;;  %vm363_vm4 = vweird.f32 %v691_v57 }
 0x9b4   :  { %vm364_vm8 = vmor %vm362_vm5, %vm363_vm4 }
 0x9b5   :  { %v359_v59 = vsub.f32 1.0, %v358_v58 }
 0x9b7   :  { %v360_v60 = vmul.f32 %v691_v57, %v359_v59 }
 0x9b9   :  { %v361_v61 = vadd.f32 %v691_v57, %v360_v60 }
 0x9bb   :  { %v365_v0 = vsel %vm364_vm8, %v691_v57, %v361_v61  ;;  %vm625_vm8 = vcmask 15360  }
 0x9bc   :  { %v370_v3 = vsel %vm367_vm9, %v369_v1, %v365_v0  ;;  %v527_v0 = vld [vmem:[#allocation2 + $0x7] sm:$0x1] }
 0x9bd   :  { %v373_v5 = vmul.f32 %v370_v3, %v317_v45 }
 0xa1a   :  { %v376_v2 = vpop.permute.xlu1 %375 }
 0xa1b   :  { %v378_v4 = vmul.f32 %v376_v2, %v370_v3 }
 0xa1d   :  { %380 = vrot.lane.b32.xlu2 %v378_v4, %s720_s3 }
 0xa77   :  { %v381_v6 = vpop.permute.xlu2 %380 }
 0xa78   :  { %v383_v7 = vadd.f32 %v381_v6, %v373_v5 }
 0xa7a   :  { %692 = vtanh.f32 %v383_v7 }
 0xa80   :  { %v693_v8 = vpop.eup %692 }
 0xa81   :  { %386 = vrot.lane.b32.xlu0 %v693_v8, %s719_s8 }
 0xaf3   :  { %v387_v9 = vpop.permute.xlu0 %386 }
 0xaf4   :  { %v389_v10 = vmul.f32 %v387_v9, %v370_v3 }
 0xaf6   :  { %391 = vrot.lane.b32.xlu1 %v389_v10, %s720_s3 }
 0xb68   :  { %v392_v11 = vpop.permute.xlu1 %391 }
 0xb69   :  { %394 = vst.msk [vmem:[#allocation3 + $0x4] sm:$0x1] %vm129_vm6, %v392_v11  ;;  %642 = vmatmul.msk.f32.vlgmr.msrb.gmra.mxu2 %vm63_vm7, %v392_v11 }
 0xbec   :  { %v415_v13 = vpop.f32.mrf.mxu2 }
 0xbed   :  { %v418_v14 = vadd.f32 %v415_v13, %v395_v12 }
 0xbef   :  { %694 = vtanh.f32 %v418_v14  ;;  %v643_v16 = vmul.f32 -1.442695, %v418_v14 }
 0xbf1   :  { %696 = vpow2.f32 %v643_v16 }
 0xbf5   :  { %v695_v15 = vpop.eup %694 }
 0xbf6   :  { %441 = vrot.lane.b32.xlu2 %v695_v15, %s719_s8 }
 0xbf7   :  { %v697_v17 = vpop.eup %696 }
 0xbf8   :  { %v422_v18 = vadd.f32 1.0, %v697_v17 }
 0xbfa   :  { %698 = vrcp.f32 %v422_v18  ;;  %v434_v24 = vand.u32 2147483648, %v422_v18  ;;  %vm428_vm11 = vweird.f32 %v422_v18  ;;  %v432_v25 = vand.u32 2147483647, %v422_v18 }
 0xbfc   :  { %v435_v27 = vor.u32 1.1754944e-38, %v434_v24  ;;  %vm433_vm13 = vcmp.eq.f32.partialorder %v432_v25, 8.507059e+37  ;;  %v597_v25 = vld [vmem:[%s848_s4 + $0x18] sm:$0xff] }
 0xbfd   :  { %617 = vmatpush.msra.mxu1 %v597_v25 }
 0xc00   :  { %v699_v19 = vpop.eup %698 }
 0xc01   :  { %v424_v20 = vmul.f32 %v699_v19, %v422_v18  ;;  %vm429_vm10 = vweird.f32 %v699_v19 }
 0xc02   :  { %vm430_vm12 = vmor %vm428_vm11, %vm429_vm10 }
 0xc03   :  { %v425_v21 = vsub.f32 1.0, %v424_v20 }
 0xc05   :  { %v426_v22 = vmul.f32 %v699_v19, %v425_v21 }
 0xc07   :  { %v427_v23 = vadd.f32 %v699_v19, %v426_v22 }
 0xc09   :  { %v431_v26 = vsel %vm430_vm12, %v699_v19, %v427_v23 }
 0xc0a   :  { %v436_v29 = vsel %vm433_vm13, %v435_v27, %v431_v26  ;;  %v596_v26 = vld [vmem:[%s848_s4 + $0x10] sm:$0xff]  ;;  %v595_v27 = vld [vmem:[%s848_s4 + $0x8] sm:$0xff] }
 0xc0b   :  { %v439_v31 = vmul.f32 %v436_v29, %v383_v7  ;;  %618 = vmatpush.msra.mxu1 %v596_v26 }
 0xc0d   :  { %619 = vmatpush.msra.mxu1 %v595_v27 }
 0xc50   :  { %v442_v28 = vpop.permute.xlu2 %441 }
 0xc51   :  { %v444_v30 = vmul.f32 %v442_v28, %v436_v29  ;;  %v594_v28 = vld [vmem:[%s848_s4] sm:$0xff] }
 0xc52   :  { %620 = vmatpush.msra.mxu1 %v594_v28 }
 0xc53   :  { %446 = vrot.lane.b32.xlu0 %v444_v30, %s720_s3 }
 0xcc5   :  { %v447_v32 = vpop.permute.xlu0 %446 }
 0xcc6   :  { %v449_v33 = vadd.f32 %v447_v32, %v439_v31  ;;  %v653_v31 = vld [vmem:[%s847_s5] ss:$0 sm:$0xff] }
 0xcc8   :  { %700 = vtanh.f32 %v449_v33 }
 0xcce   :  { %v701_v34 = vpop.eup %700 }
 0xccf   :  { %452 = vrot.lane.b32.xlu1 %v701_v34, %s719_s8 }
 0xd41   :  { %v453_v35 = vpop.permute.xlu1 %452 }
 0xd42   :  { %v455_v36 = vmul.f32 %v453_v35, %v436_v29 }
 0xd44   :  { %457 = vrot.lane.b32.xlu2 %v455_v36, %s720_s3 }
 0xd9e   :  { %v458_v37 = vpop.permute.xlu2 %457 }
 0xd9f   :  { %460 = vst.msk [vmem:[#allocation3 + $0x5] sm:$0x1] %vm129_vm6, %v458_v37  ;;  %644 = vmatmul.msk.f32.vlgmr.msrb.gmra.mxu3 %vm63_vm7, %v458_v37 }
 0xe22   :  { %v481_v39 = vpop.f32.mrf.mxu3 }
 0xe23   :  { %v484_v40 = vadd.f32 %v481_v39, %v461_v38 }
 0xe25   :  { %702 = vtanh.f32 %v484_v40  ;;  %v645_v42 = vmul.f32 -1.442695, %v484_v40 }
 0xe27   :  { %704 = vpow2.f32 %v645_v42 }
 0xe2b   :  { %v703_v41 = vpop.eup %702 }
 0xe2c   :  { %507 = vrot.lane.b32.xlu0 %v703_v41, %s719_s8 }
 0xe2d   :  { %v705_v43 = vpop.eup %704 }
 0xe2e   :  { %v488_v44 = vadd.f32 1.0, %v705_v43 }
 0xe30   :  { %706 = vrcp.f32 %v488_v44  ;;  %v500_v50 = vand.u32 2147483648, %v488_v44  ;;  %vm494_vm15 = vweird.f32 %v488_v44  ;;  %v498_v51 = vand.u32 2147483647, %v488_v44 }
 0xe32   :  { %v501_v53 = vor.u32 1.1754944e-38, %v500_v50  ;;  %vm499_vm1 = vcmp.eq.f32.partialorder %v498_v51, 8.507059e+37 }
 0xe36   :  { %v707_v45 = vpop.eup %706 }
 0xe37   :  { %v490_v46 = vmul.f32 %v707_v45, %v488_v44  ;;  %vm495_vm14 = vweird.f32 %v707_v45 }
 0xe38   :  { %vm496_vm0 = vmor %vm494_vm15, %vm495_vm14 }
 0xe39   :  { %v491_v47 = vsub.f32 1.0, %v490_v46 }
 0xe3b   :  { %v492_v48 = vmul.f32 %v707_v45, %v491_v47 }
 0xe3d   :  { %v493_v49 = vadd.f32 %v707_v45, %v492_v48 }
 0xe3f   :  { %v497_v52 = vsel %vm496_vm0, %v707_v45, %v493_v49 }
 0xe40   :  { %v502_v55 = vsel %vm499_vm1, %v501_v53, %v497_v52 }
 0xe41   :  { %v505_v57 = vmul.f32 %v502_v55, %v449_v33 }
 0xe9e   :  { %v508_v54 = vpop.permute.xlu0 %507 }
 0xe9f   :  { %v510_v56 = vmul.f32 %v508_v54, %v502_v55 }
 0xea1   :  { %512 = vrot.lane.b32.xlu1 %v510_v56, %s720_s3 }
 0xf13   :  { %v513_v58 = vpop.permute.xlu1 %512 }
 0xf14   :  { %v515_v59 = vadd.f32 %v513_v58, %v505_v57 }
 0xf16   :  { %708 = vtanh.f32 %v515_v59 }
 0xf1c   :  { %v709_v60 = vpop.eup %708 }
 0xf1d   :  { %518 = vrot.lane.b32.xlu2 %v709_v60, %s719_s8 }
 0xf77   :  { %v519_v61 = vpop.permute.xlu2 %518 }
 0xf78   :  { %v521_v62 = vmul.f32 %v519_v61, %v502_v55 }
 0xf7a   :  { %523 = vrot.lane.b32.xlu0 %v521_v62, %s720_s3 }
 0xfec   :  { %v524_v63 = vpop.permute.xlu0 %523 }
 0xfed   :  { %526 = vst.msk [vmem:[#allocation3 + $0x6] sm:$0x1] %vm129_vm6, %v524_v63  ;;  %646 = vmatmul.msk.f32.vlgmr.msra.gmra.mxu0 %vm63_vm7, %v524_v63 }
0x106a   :  { %v547_v1 = vpop.f32.mrf.mxu0 }
0x106b   :  { %v550_v2 = vadd.f32 %v547_v1, %v527_v0 }
0x106d   :  { %710 = vtanh.f32 %v550_v2  ;;  %v647_v4 = vmul.f32 -1.442695, %v550_v2 }
0x106f   :  { %712 = vpow2.f32 %v647_v4 }
0x1073   :  { %v711_v3 = vpop.eup %710 }
0x1074   :  { %573 = vrot.lane.b32.xlu1 %v711_v3, %s719_s8 }
0x1075   :  { %v713_v5 = vpop.eup %712 }
0x1076   :  { %v554_v6 = vadd.f32 1.0, %v713_v5 }
0x1078   :  { %714 = vrcp.f32 %v554_v6  ;;  %v566_v12 = vand.u32 2147483648, %v554_v6  ;;  %vm560_vm3 = vweird.f32 %v554_v6  ;;  %v564_v13 = vand.u32 2147483647, %v554_v6 }
0x107a   :  { %v567_v15 = vor.u32 1.1754944e-38, %v566_v12  ;;  %vm565_vm5 = vcmp.eq.f32.partialorder %v564_v13, 8.507059e+37 }
0x107e   :  { %v715_v7 = vpop.eup %714 }
0x107f   :  { %v556_v8 = vmul.f32 %v715_v7, %v554_v6  ;;  %vm561_vm2 = vweird.f32 %v715_v7 }
0x1080   :  { %vm562_vm4 = vmor %vm560_vm3, %vm561_vm2 }
0x1081   :  { %v557_v9 = vsub.f32 1.0, %v556_v8 }
0x1083   :  { %v558_v10 = vmul.f32 %v715_v7, %v557_v9 }
0x1085   :  { %v559_v11 = vadd.f32 %v715_v7, %v558_v10 }
0x1087   :  { %v563_v14 = vsel %vm562_vm4, %v715_v7, %v559_v11 }
0x1088   :  { %v568_v17 = vsel %vm565_vm5, %v567_v15, %v563_v14 }
0x1089   :  { %v571_v19 = vmul.f32 %v568_v17, %v515_v59 }
0x10e6   :  { %v574_v16 = vpop.permute.xlu1 %573 }
0x10e7   :  { %v576_v18 = vmul.f32 %v574_v16, %v568_v17 }
0x10e9   :  { %578 = vrot.lane.b32.xlu2 %v576_v18, %s720_s3 }
0x1143   :  { %v579_v20 = vpop.permute.xlu2 %578 }
0x1144   :  { %v581_v21 = vadd.f32 %v579_v20, %v571_v19 }
0x1146   :  { %716 = vtanh.f32 %v581_v21 }
0x114c   :  { %v717_v22 = vpop.eup %716 }
0x114d   :  { %584 = vrot.lane.b32.xlu0 %v717_v22, %s719_s8 }
0x11bf   :  { %v585_v23 = vpop.permute.xlu0 %584 }
0x11c0   :  { %v587_v24 = vmul.f32 %v585_v23, %v568_v17 }
0x11c2   :  { %589 = vrot.lane.b32.xlu1 %v587_v24, %s720_s3 }
0x1234   :  { %v590_v29 = vpop.permute.xlu1 %589 }
0x1235   :  { %592 = vst.msk [vmem:[#allocation3 + $0x7] sm:$0x1] %vm129_vm6, %v590_v29 }
0x123c   :  { %v593_v30 = vld [vmem:[#allocation3] sm:$0xff] }
0x123d   :  { %648 = vmatmul.msk.f32.vlgmr.msra.gmra.mxu1 %vm63_vm7, %v593_v30 }
0x12ba   :  { %v622_v32 = vpop.f32.mrf.mxu1 }
0x12bb   :  { %v623_v33 = vadd.f32 %v653_v31, %v622_v32 }
0x12bd   :  { %626 = vst.msk [vmem:[%s849_s6] sm:$0xff] %vm625_vm8, %v623_v33 }

</bundles_post_ra>
